<compile_context>
chip_gen: v7x
topology: tpu7x:2x2x1
jax: 0.10.0
libtpu: 0.0.40
codegen_flags: <defaults>
</compile_context>

<pallas_src>
import functools
import math

import jax
import jax.numpy as jnp
from jax.experimental import pallas as pl
from jax.experimental.pallas import tpu as pltpu

_EPS = 1e-12  # matches torch.nn.functional.normalize default eps


def _cosface_kernel(margin, matmul_dtype, y_ref, inv_wn_ref, x_ref, w_ref, out_ref):
    """Computes one (TB, TC) output tile.

    y_ref      : (TB, 1)  int32   labels for this B tile
    inv_wn_ref : (1, TC)  float32 1 / max(||W[:, c]||, eps) for this C tile
    x_ref      : (TB, D)  float32 raw (un-normalized) features
    w_ref      : (D, TC)  float32 raw (un-normalized) class weights
    out_ref    : (TB, TC) float32 scaled margin-cosine logits
    """
    x = x_ref[...].astype(jnp.float32)                        # (TB, D)

    # Row-wise sum of squares -> norm and inverse norm (EUP rsqrt).
    sumsq = jnp.sum(x * x, axis=1, keepdims=True)             # (TB, 1)
    x_norm = jnp.sqrt(sumsq)                                  # (TB, 1)
    inv_x = jax.lax.rsqrt(jnp.maximum(sumsq, _EPS * _EPS))    # == 1 / max(||x||, eps)

    # Raw matmul on the MXU (bf16 operands by default, f32 accumulation).
    raw = jnp.dot(
        x.astype(matmul_dtype),
        w_ref[...].astype(matmul_dtype),
        preferred_element_type=jnp.float32,
    )                                                         # (TB, TC)

    # base == cosine * x_norm.  row_scale = x_norm / max(x_norm, eps) is 1.0
    # for normal rows and exactly 0 for all-zero rows (matches the reference).
    row_scale = x_norm * inv_x                                # (TB, 1)
    base = raw * inv_wn_ref[...] * row_scale                  # (TB, TC)

    # Subtract margin * x_norm on the target class only.  Class ids must be
    # GLOBAL since C is tiled across the grid.
    tc = out_ref.shape[1]
    cls_ids = (
        jax.lax.broadcasted_iota(jnp.int32, base.shape, 1) + pl.program_id(1) * tc
    )
    y_hat = jnp.where(cls_ids == y_ref[...], base - margin * x_norm, base)

    out_ref[...] = y_hat.astype(out_ref.dtype)


def cosface_loss_forward(
    x,
    y,
    weight,
    margin=0.35,
    *,
    matmul_dtype=jnp.bfloat16,
    tb_max=256,
    tc_max=1024,
    vmem_limit_bytes=None,
):
    """Pallas CosFace forward.

    x      : (B, D)  float32 features
    y      : (B, 1)  int32   labels
    weight : (D, C)  float32 class weights
    returns: (B, C)  float32 scaled margin-cosine logits
    """
    B, D = x.shape
    Dw, C = weight.shape
    assert D == Dw and y.shape == (B, 1)

    # Hoisted once per call (instead of once per B tile inside the kernel):
    # inverse L2 norm of every weight column, shape (1, C).
    inv_w_norm = jax.lax.rsqrt(
        jnp.maximum(jnp.sum(jnp.square(weight), axis=0, keepdims=True), _EPS * _EPS)
    ).astype(jnp.float32)

    def _round_up(v, m):
        return ((v + m - 1) // m) * m

    tb = min(_round_up(B, 8), tb_max)      # sublane-aligned B tile
    tc = min(_round_up(C, 128), tc_max)    # lane-dense C tile (multiple of 128)
    grid = (pl.cdiv(B, tb), pl.cdiv(C, tc))

    kernel = functools.partial(_cosface_kernel, margin, matmul_dtype)

    return pl.pallas_call(
        kernel,
        out_shape=jax.ShapeDtypeStruct((B, C), jnp.float32),
        grid_spec=pltpu.PrefetchScalarGridSpec(
            num_scalar_prefetch=0,
            grid=grid,
            in_specs=[
                pl.BlockSpec((tb, 1), lambda i, j: (i, 0)),   # labels
                pl.BlockSpec((1, tc), lambda i, j: (0, j)),   # 1 / ||W[:, c]||
                pl.BlockSpec((tb, D), lambda i, j: (i, 0)),   # x (D untiled)
                pl.BlockSpec((D, tc), lambda i, j: (0, j)),   # W (D untiled)
            ],
            out_specs=pl.BlockSpec((tb, tc), lambda i, j: (i, j)),
        ),
        compiler_params=pltpu.CompilerParams(
            dimension_semantics=("parallel", "parallel"),
            vmem_limit_bytes=vmem_limit_bytes,
        ),
    )(y, inv_w_norm, x, weight)


def _xavier_uniform(key, shape):
    # torch.nn.init.xavier_uniform_ on a (feat_dim, num_classes) tensor.
    fan_out, fan_in = shape
    bound = math.sqrt(6.0 / (fan_in + fan_out))
    return jax.random.uniform(key, shape, jnp.float32, minval=-bound, maxval=bound)


def _reference(x, y, weight, margin):
    # Pure-JAX mirror of the PyTorch module.
    x_norm = jnp.linalg.norm(x, axis=1, keepdims=True)
    x_n = x / jnp.maximum(x_norm, _EPS)
    w_n = weight / jnp.maximum(jnp.linalg.norm(weight, axis=0, keepdims=True), _EPS)
    cosine = x_n @ w_n
    one_hot = jax.nn.one_hot(y[:, 0], weight.shape[1], dtype=jnp.float32)
    return (one_hot * (cosine - margin) + (1.0 - one_hot) * cosine) * x_norm


if __name__ == "__main__":
    batch = 8
    feat_dim = 32
    num_classes = 128
    margin = 0.35

    key = jax.random.PRNGKey(0)
    kx, ky, kw = jax.random.split(key, 3)

    x = jax.random.normal(kx, (batch, feat_dim), jnp.float32)
    y = jax.random.randint(ky, (batch, 1), 0, num_classes, jnp.int32)
    weight = _xavier_uniform(kw, (feat_dim, num_classes))

    ref = _reference(x, y, weight, margin)

    # Default path: bf16 MXU matmul, f32 accumulation + scaling.
    out_bf16 = jax.block_until_ready(cosface_loss_forward(x, y, weight, margin=margin))
    assert out_bf16.shape == (batch, num_classes)
    assert jnp.allclose(out_bf16, ref, atol=5e-2, rtol=5e-2), float(
        jnp.max(jnp.abs(out_bf16 - ref))
    )

    # Full-f32 matmul path for a tight numerical check against the reference.
    out_f32 = jax.block_until_ready(
        cosface_loss_forward(x, y, weight, margin=margin, matmul_dtype=jnp.float32)
    )
    assert jnp.allclose(out_f32, ref, atol=1e-4, rtol=1e-4), float(
        jnp.max(jnp.abs(out_f32 - ref))
    )

    print("KERNEL_OK")
</pallas_src>

<mosaic_0001>
module attributes {stable_mosaic.version = 11 : i64} {
  func.func @_cosface_kernel(%arg0: i32, %arg1: i32, %arg2: memref<8x1xi32, #tpu.memory_space<vmem>>, %arg3: memref<1x128xf32, #tpu.memory_space<vmem>>, %arg4: memref<8x32xf32, #tpu.memory_space<vmem>>, %arg5: memref<32x128xf32, #tpu.memory_space<vmem>>, %arg6: memref<8x128xf32, #tpu.memory_space<vmem>>) attributes {dimension_semantics = [#tpu.dimension_semantics<parallel>, #tpu.dimension_semantics<parallel>], iteration_bounds = array<i64: 1, 1>, scalar_prefetch = 0 : i64, scratch_operands = 0 : i64, tpu.core_type = #tpu.core_type<tc>, window_params = [{transform_indices = @transform_0, window_bounds = array<i64: 8, 1>}, {transform_indices = @transform_1, window_bounds = array<i64: 1, 128>}, {transform_indices = @transform_2, window_bounds = array<i64: 8, 32>}, {transform_indices = @transform_3, window_bounds = array<i64: 32, 128>}, {transform_indices = @transform_4, window_bounds = array<i64: 8, 128>}]} {
    %c0 = arith.constant 0 : index
    %c0_0 = arith.constant 0 : index
    %0 = vector.load %arg4[%c0, %c0_0] : memref<8x32xf32, #tpu.memory_space<vmem>>, vector<8x32xf32>
    %1 = arith.mulf %0, %0 : vector<8x32xf32>
    %cst = arith.constant dense<0.000000e+00> : vector<8xf32>
    %2 = vector.multi_reduction <add>, %1, %cst [1] : vector<8x32xf32> to vector<8xf32>
    %3 = vector.shape_cast %2 : vector<8xf32> to vector<8x1xf32>
    %4 = math.sqrt %3 : vector<8x1xf32>
    %cst_1 = arith.constant 1.000000e-24 : f32
    %5 = vector.broadcast %cst_1 : f32 to vector<8x1xf32>
    %6 = arith.maximumf %3, %5 : vector<8x1xf32>
    %7 = math.rsqrt %6 : vector<8x1xf32>
    %8 = arith.truncf %0 : vector<8x32xf32> to vector<8x32xbf16>
    %c0_2 = arith.constant 0 : index
    %c0_3 = arith.constant 0 : index
    %9 = vector.load %arg5[%c0_2, %c0_3] : memref<32x128xf32, #tpu.memory_space<vmem>>, vector<32x128xf32>
    %10 = arith.truncf %9 : vector<32x128xf32> to vector<32x128xbf16>
    %cst_4 = arith.constant dense<0.000000e+00> : vector<8x128xf32>
    %11 = tpu.matmul %8, %10, %cst_4 {dimension_numbers = #tpu.dot_dimension_numbers<[1], [0], [0], [1], [0, 0, 1, 1], [], []>} : vector<8x32xbf16>, vector<32x128xbf16>, vector<8x128xf32> -> vector<8x128xf32>
    %12 = arith.mulf %4, %7 : vector<8x1xf32>
    %c0_5 = arith.constant 0 : index
    %c0_6 = arith.constant 0 : index
    %13 = vector.load %arg3[%c0_5, %c0_6] : memref<1x128xf32, #tpu.memory_space<vmem>>, vector<1x128xf32>
    %14 = vector.broadcast %13 : vector<1x128xf32> to vector<8x128xf32>
    %15 = arith.mulf %11, %14 : vector<8x128xf32>
    %16 = vector.broadcast %12 : vector<8x1xf32> to vector<8x128xf32>
    %17 = arith.mulf %15, %16 : vector<8x128xf32>
    %18 = tpu.iota {dimensions = array<i32: 1>} : vector<8x128xi32>
    %c128_i32 = arith.constant 128 : i32
    %19 = arith.muli %arg1, %c128_i32 : i32
    %20 = vector.broadcast %19 : i32 to vector<8x128xi32>
    %21 = arith.addi %18, %20 : vector<8x128xi32>
    %c0_7 = arith.constant 0 : index
    %c0_8 = arith.constant 0 : index
    %22 = vector.load %arg2[%c0_7, %c0_8] : memref<8x1xi32, #tpu.memory_space<vmem>>, vector<8x1xi32>
    %23 = vector.broadcast %22 : vector<8x1xi32> to vector<8x128xi32>
    %24 = arith.cmpi eq, %21, %23 : vector<8x128xi32>
    %cst_9 = arith.constant 3.500000e-01 : f32
    %25 = vector.broadcast %cst_9 : f32 to vector<8x1xf32>
    %26 = arith.mulf %25, %4 : vector<8x1xf32>
    %27 = vector.broadcast %26 : vector<8x1xf32> to vector<8x128xf32>
    %28 = arith.subf %17, %27 : vector<8x128xf32>
    %29 = arith.select %24, %28, %17 : vector<8x128xi1>, vector<8x128xf32>
    %c0_10 = arith.constant 0 : index
    %c0_11 = arith.constant 0 : index
    %30 = vector.load %arg6[%c0_10, %c0_11] : memref<8x128xf32, #tpu.memory_space<vmem>>, vector<8x128xf32>
    tpu.vector_store %arg6[%c0_10, %c0_11], %29 {strides = array<i32>} : memref<8x128xf32, #tpu.memory_space<vmem>>, vector<8x128xf32>,
    return
  }
  func.func @transform_0(%arg0: i32, %arg1: i32) -> (i32, i32) {
    %c0_i32 = arith.constant 0 : i32
    %c0_i32_0 = arith.constant 0 : i32
    return %arg0, %c0_i32 : i32, i32
  }
  func.func @transform_1(%arg0: i32, %arg1: i32) -> (i32, i32) {
    %c0_i32 = arith.constant 0 : i32
    %c0_i32_0 = arith.constant 0 : i32
    return %c0_i32, %arg1 : i32, i32
  }
  func.func @transform_2(%arg0: i32, %arg1: i32) -> (i32, i32) {
    %c0_i32 = arith.constant 0 : i32
    %c0_i32_0 = arith.constant 0 : i32
    return %arg0, %c0_i32 : i32, i32
  }
  func.func @transform_3(%arg0: i32, %arg1: i32) -> (i32, i32) {
    %c0_i32 = arith.constant 0 : i32
    %c0_i32_0 = arith.constant 0 : i32
    return %c0_i32, %arg1 : i32, i32
  }
  func.func @transform_4(%arg0: i32, %arg1: i32) -> (i32, i32) {
    %c0_i32 = arith.constant 0 : i32
    return %arg0, %arg1 : i32, i32
  }
}

</mosaic_0001>

<bundles_post_ra>
// kernel: tpu_custom_call.1
= control target key start
LH: loop header
LB: loop body
LE: loop exit
PB: predicated region body
PF: predicated region fallthrough
CT: control target
= control target key end

     0   :  { %9 = vsyncpa [#allocation3], 0  ;;  %s275_s0 = inlined_call_operand.vmem [shape: s32[8,1], index: 0, kind: input, shape index: {}]   ;;  %s276_s1 = inlined_call_operand.vmem [shape: f32[1,128], index: 1, kind: input, shape index: {}]   ;;  %s277_s2 = inlined_call_operand.vmem [shape: f32[8,32], index: 2, kind: input, shape index: {}]   ;;  %s278_s3 = inlined_call_operand.hbm [shape: f32[32,128], index: 3, kind: input, shape index: {}]   ;;  %s279_s4 = inlined_call_operand.hbm [shape: f32[8,128], index: 4, kind: output, shape index: {}]  }
   0x1   :  { %10 = vsyncpa [#allocation4], 0  ;;  %s210_s15 = smov [#allocation2]   ;;  %s162_s19 = scalar_lea.hbm %s278_s3, 512 }
   0x2   :  { %s22_s16 = sshll.u32 %s210_s15, 4  ;;  %p163_p0 = scmp.ne.s32.totalorder %s278_s3, %s162_s19  ;;  %s23_s16 = int_to_ptr.vmem [resolvable:$true] %s22_s16 }
   0x3   :  { %p166_p1 = scmp.lt.u32.totalorder %s162_s19, %s278_s3 }
   0x5   :  { %p168_p2 = pnand %p166_p1, %p163_p0 }
   0x7   :  { %171 = shalt.err (!%p168_p2)
}
   0x8   :  { %s172_s24 = scalar_lea.vmem %s23_s16, 512  ;;  %p177_p4 = scmp.lt.s32.totalorder %s23_s16, %s23_s16 }
   0x9   :  { %p173_p3 = scmp.ne.s32.totalorder %s23_s16, %s172_s24  ;;  %p178_p5 = scmp.lt.s32.totalorder %s172_s24, %s172_s24 }
   0xb   :  { %p179_p6 = por %p178_p5, %p177_p4 }
   0xd   :  { %p180_p7 = pnand %p179_p6, %p173_p3 }
   0xf   :  { %183 = shalt.err (!%p180_p7)
}
  0x10   :  { %s211_s25 = smov 128   ;;  %s212_s26 = smov 8  }
  0x11   :  { %28 = dma.hbm_to_vmem [thread:$0]  %s278_s3, 512, %s23_s16, [#allocation3], %s211_s25, %s211_s25, %s212_s26  }
  0x12   :  { %206 = dma.done.wait [#allocation3], 512  }
  0x13   :  { %207 = vsyncadd [#allocation3], 4294966784  ;;  %v213_v0 = vmov 0.0   ;;  %vm214_vm0 = vmmov 0   ;;  %v215_v1 = vmov 0   ;;  %v49_v2 = vld [vmem:[#allocation2] sm:$0xff]  ;;  %v108_v19 = vlaneseq }
  0x14   :  { %142 = vmatprep.subr.bf16.mxu0 %v213_v0  ;;  %146 = vmatprep.mubr.msk.bf16.mxu0 %vm214_vm0, %v213_v0  ;;  %v50_v3 = vld [vmem:[#allocation2 + $0x8] sm:$0xff]  ;;  %v51_v4 = vld [vmem:[#allocation2 + $0x10] sm:$0xff]  ;;  %v52_v6 = vld [vmem:[#allocation2 + $0x18] sm:$0xff]  ;;  %vm35_vm1 = vcmask 261120  }
  0x15   :  { %157 = vset.pattern.permute.xlu0 %v215_v1  ;;  %v53_v5 = vpack.c.bf16 %v50_v3, %v49_v2  ;;  %v33_v7 = vld [vmem:[%s277_s2] sm:$0xff]  ;;  %v54_v9 = vpack.c.bf16 %v52_v6, %v51_v4  ;;  %v109_v24 = vand.u32 127, %v108_v19 }
  0x16   :  { %v34_v8 = vmul.f32 %v33_v7, %v33_v7  ;;  %v48_v11 = vpack.c.bf16 %v33_v7, %v33_v7  ;;  %v113_v12 = vld [vmem:[%s275_s0] sm:$0xff]  ;;  %s216_s0 = smov [#allocation5]  }
  0x17   :  { %143 = vmatpush3.bf16.msra.mxu0 %v53_v5  ;;  %v138_v22 = vld [vmem:[%s276_s1] ss:$0 sm:$0xff]  ;;  %s128_s7 = sshll.u32 %s216_s0, 4  ;;  %s129_s7 = int_to_ptr.vmem [resolvable:$true] %s128_s7 }
  0x18   :  { %144 = vmatprep.subr.bf16.mxu0 %v213_v0  ;;  %v36_v10 = vsel %vm35_vm1, %v34_v8, 0.0  ;;  %s184_s8 = scalar_lea.vmem %s129_s7, 128  ;;  %p189_p9 = scmp.lt.s32.totalorder %s129_s7, %s129_s7 }
  0x19   :  { %37 = vadd.xlane.f32.xlu0 %v36_v10  ;;  %p185_p8 = scmp.ne.s32.totalorder %s129_s7, %s184_s8  ;;  %p190_p10 = scmp.lt.s32.totalorder %s184_s8, %s184_s8 }
  0x1b   :  { %145 = vmatpush3.bf16.msra.mxu0 %v54_v9  ;;  %p191_p11 = por %p190_p10, %p189_p9 }
  0x1d   :  { %p192_p12 = pnand %p191_p11, %p185_p8 }
  0x1e   :  { %147 = vmatmul.mubr.msk.bf16.vlgmr.msra.gmra.mrb[0].mxu0 %vm35_vm1, %v48_v11 }
  0x2f   :  { %115 = vperm.xlu0 %157, %v113_v12  }
  0xa6   :  { %v38_v13 = vpop.xlane.xlu0 %37 }
  0xa7   :  { %158 = vrsqrt.f32 %v38_v13  ;;  %v46_v14 = vmax.f32 %v38_v13, 1e-24  ;;  %vm41_vm2 = vcmp.eq.f32.partialorder %v38_v13, inf  ;;  %v44_v17 = vand.u32 2147483648, %v38_v13 }
  0xa8   :  { %vm43_vm3 = vcmp.eq.f32.partialorder %v38_v13, 0.0 }
  0xa9   :  { %160 = vrsqrt.f32 %v46_v14 }
  0xae   :  { %v116_v28 = vpop.permute.xlu0 %115 }
  0xaf   :  { %vm117_vm4 = vcmp.eq.s32.totalorder %v109_v24, %v116_v28 }
  0xb1   :  { %v159_v15 = vpop.eup %158 }
  0xb2   :  { %v40_v16 = vmul.f32 %v159_v15, %v38_v13 }
  0xb3   :  { %v161_v20 = vpop.eup %160 }
  0xb4   :  { %v42_v18 = vsel %vm41_vm2, %v38_v13, %v40_v16 }
  0xb5   :  { %v45_v21 = vsel %vm43_vm3, %v44_v17, %v42_v18 }
  0xb6   :  { %v98_v25 = vmul.f32 %v161_v20, %v45_v21  ;;  %v118_v31 = vmul.f32 0.35, %v45_v21 }
  0xf1   :  { %v92_v23 = vpop.f32.mrb[0].mxu0 }
  0xf2   :  { %v106_v26 = vmul.f32 %v138_v22, %v92_v23  ;;  %v148_v27 = vpop.f32.mrb[1].mxu0 }
  0xf3   :  { %v95_v29 = vpop.f32.mrb[2].mxu0 }
  0xf4   :  { %v107_v30 = vmul.f32 %v106_v26, %v98_v25  ;;  %v149_v32 = vpop.f32.mrb[3].mxu0 }
  0xf6   :  { %v119_v33 = vsub.f32 %v107_v30, %v118_v31 }
  0xf8   :  { %v120_v34 = vsel %vm117_vm4, %v119_v33, %v107_v30 }
  0xf9   :  { %121 = vst [vmem:[#allocation5] sm:$0xff] %v120_v34 }
  0xfa   :  { %195 = shalt.err (!%p192_p12)
}
  0xfb   :  { %s196_s10 = scalar_lea.hbm %s279_s4, 128 }
  0xfc   :  { %p197_p13 = scmp.ne.s32.totalorder %s279_s4, %s196_s10  ;;  %p200_p0 = scmp.lt.u32.totalorder %s196_s10, %s279_s4 }
  0xfe   :  { %p202_p1 = pnand %p200_p0, %p197_p13 }
 0x100   :  { %205 = shalt.err (!%p202_p1)
}
 0x101   :  { %131 = dma.vmem_to_hbm [thread:$0]  %s129_s7, 128, %s279_s4, [#allocation4]  }
 0x102   :  { %208 = dma.done.wait [#allocation4], 128  }
 0x103   :  { %209 = vsyncadd [#allocation4], 4294967168 }
 0x104   :  { %135 = vsyncpa [#allocation3], 1 }
 0x105   :  { %136 = vsyncpa [#allocation4], 1 }

</bundles_post_ra>
